<compile_context>
chip_gen: v7x
topology: tpu7x:2x2x1
jax: 0.10.0
libtpu: 0.0.40
codegen_flags: <defaults>
</compile_context>

<pallas_src>
import jax
import jax.numpy as jnp
from jax.experimental import pallas as pl
from jax.experimental.pallas import tpu as pltpu

SCALE = 0.09
EPS = 1e-6


def _round_up(v, m):
    return (v + m - 1) // m * m


def _tile_profile():
    """Per-generation tile caps + scoped-VMEM limit."""
    kind = ""
    try:
        kind = jax.devices()[0].device_kind.lower()
    except Exception:
        pass
    if "v7" in kind or not kind:
        # v7x: 64 MiB VMEM per TensorCore -> keep the double-buffered footprint
        # modest (~7 MiB for the caps below) and a conservative scoped limit.
        return 256, 512, 1024, 40 << 20
    # v4 / v5e / v5p / v6e: 128 MiB VMEM.  Big tiles (~22 MiB double-buffered)
    # cut redundant HBM re-reads of x and W; raise the scoped limit explicitly
    # (v5e default is only 16 MiB).
    return 256, 1024, 2048, 64 << 20


def cos_linear_kernel(x_ref, w_ref, ix_ref, iw_ref, o_ref):
    """One (i, j, k) grid step.

    x_ref : [tm, tk]  raw x tile
    w_ref : [tk, tn]  raw W^T tile
    ix_ref: [tm, 1]   (1/scale) / (||x_row|| + eps)
    iw_ref: [1, tn]   1 / (||W_row|| + eps)
    o_ref : [tm, tn]  f32 output tile; VMEM-resident across the k axis.
    """
    k = pl.program_id(2)

    @pl.when(k == 0)
    def _init():
        o_ref[...] = jnp.zeros_like(o_ref)

    # bf16 operands with f32 accumulation: full-rate MXU on v6e/v7x; the
    # normalization stays exact because the inverse norms were computed in f32.
    x = x_ref[...].astype(jnp.bfloat16)
    w = w_ref[...].astype(jnp.bfloat16)
    o_ref[...] += jnp.dot(x, w, preferred_element_type=jnp.float32)

    @pl.when(k == pl.num_programs(2) - 1)
    def _finalize():
        # Rank-1 scaling by the precomputed inverse row norms (1/scale is
        # already folded into ix).  Pure VPU work, once per output tile.
        o_ref[...] = o_ref[...] * (ix_ref[...] * iw_ref[...])


def cos_linear(x, weight):
    B, indim = x.shape
    outdim, indim_w = weight.shape
    assert indim == indim_w

    tm_cap, tn_cap, tk_cap, vmem_limit = _tile_profile()

    tm = min(tm_cap, _round_up(B, 8))
    tn = min(tn_cap, _round_up(outdim, 128))
    tk = min(tk_cap, _round_up(indim, 128))

    # v7x has 2 TensorCores: if both i and j collapsed to a single block,
    # halve tn (when it stays 128-aligned) so a "parallel" axis has >=2 blocks.
    if (_round_up(B, tm) // tm == 1 and _round_up(outdim, tn) // tn == 1
            and tn >= 256 and (tn // 2) % 128 == 0):
        tn //= 2

    B_p = _round_up(B, tm)
    N_p = _round_up(outdim, tn)
    K_p = _round_up(indim, tk)

    f32 = jnp.float32
    # Tiny epilogue vectors, computed once on the unpadded arrays (exact f32).
    inv_x = (1.0 / SCALE) / (
        jnp.sqrt(jnp.sum(x.astype(f32) * x.astype(f32), axis=1, keepdims=True)) + EPS)   # [B, 1]
    inv_w = 1.0 / (
        jnp.sqrt(jnp.sum(weight.astype(f32) * weight.astype(f32), axis=1, keepdims=True)) + EPS)
    inv_w_row = inv_w.T                                                                   # [1, outdim]

    # One-time HBM-layout transpose so the kernel does a plain [tm,tk]@[tk,tn]
    # (no per-tile XLU transpose of the weight tile).
    w_t = weight.T                                                                        # [indim, outdim]

    # Zero-pad ragged edges only when needed.  Padded rows/cols contribute
    # exactly 0 to the dot and are sliced off below; the norms above were
    # computed on the unpadded arrays so padding cannot corrupt them.
    if (B_p, K_p) != (B, indim):
        x = jnp.pad(x, ((0, B_p - B), (0, K_p - indim)))
    if (K_p, N_p) != (indim, outdim):
        w_t = jnp.pad(w_t, ((0, K_p - indim), (0, N_p - outdim)))
    if B_p != B:
        inv_x = jnp.pad(inv_x, ((0, B_p - B), (0, 0)))
    if N_p != outdim:
        inv_w_row = jnp.pad(inv_w_row, ((0, 0), (0, N_p - outdim)))

    grid = (B_p // tm, N_p // tn, K_p // tk)

    out_p = pl.pallas_call(
        cos_linear_kernel,
        out_shape=jax.ShapeDtypeStruct((B_p, N_p), jnp.float32),
        grid_spec=pltpu.PrefetchScalarGridSpec(
            num_scalar_prefetch=0,
            grid=grid,
            in_specs=[
                pl.BlockSpec((tm, tk), lambda i, j, k: (i, k)),   # x tile
                pl.BlockSpec((tk, tn), lambda i, j, k: (k, j)),   # W^T tile
                pl.BlockSpec((tm, 1), lambda i, j, k: (i, 0)),    # inv_x (w/ 1/scale)
                pl.BlockSpec((1, tn), lambda i, j, k: (0, j)),    # inv_w
            ],
            out_specs=pl.BlockSpec((tm, tn), lambda i, j, k: (i, j)),
        ),
        compiler_params=pltpu.CompilerParams(
            dimension_semantics=("parallel", "parallel", "arbitrary"),
            vmem_limit_bytes=vmem_limit),
    )(x, w_t, inv_x, inv_w_row)

    return out_p[:B, :outdim]


def cos_linear_ref(x, weight):
    x_norm = jnp.linalg.norm(x, axis=1, keepdims=True)
    x_n = x / (x_norm + EPS)
    w_norm = jnp.linalg.norm(weight, axis=1, keepdims=True)
    w_n = weight / (w_norm + EPS)
    return (x_n @ w_n.T) / SCALE


if __name__ == "__main__":
    key = jax.random.PRNGKey(0)
    kx, kw = jax.random.split(key)

    B, indim, outdim = 8, 32, 16
    x = jax.random.normal(kx, (B, indim), dtype=jnp.float32)
    # Synthetic weight for nn.Linear(indim, outdim, bias=False): shape
    # [outdim, indim], uniform(-1/sqrt(indim), 1/sqrt(indim)) like PyTorch.
    bound = 1.0 / (indim ** 0.5)
    weight = jax.random.uniform(kw, (outdim, indim), dtype=jnp.float32,
                                minval=-bound, maxval=bound)

    out = jax.jit(cos_linear)(x, weight)
    out = jax.block_until_ready(out)

    ref = cos_linear_ref(x, weight)
    assert out.shape == (B, outdim)
    # bf16 MXU operands (f32 accumulation) -> compare against the exact f32
    # reference with a bf16-appropriate tolerance.
    assert jnp.allclose(out, ref, atol=1e-1, rtol=2e-2), "mismatch vs reference"

    print("KERNEL_OK")
</pallas_src>

<mosaic_0001>
module attributes {stable_mosaic.version = 11 : i64} {
  func.func @cos_linear_kernel(%arg0: i32, %arg1: i32, %arg2: i32, %arg3: memref<8x128xf32, #tpu.memory_space<vmem>>, %arg4: memref<128x128xf32, #tpu.memory_space<vmem>>, %arg5: memref<8x1xf32, #tpu.memory_space<vmem>>, %arg6: memref<1x128xf32, #tpu.memory_space<vmem>>, %arg7: memref<8x128xf32, #tpu.memory_space<vmem>>) attributes {dimension_semantics = [#tpu.dimension_semantics<parallel>, #tpu.dimension_semantics<parallel>, #tpu.dimension_semantics<arbitrary>], iteration_bounds = array<i64: 1, 1, 1>, scalar_prefetch = 0 : i64, scratch_operands = 0 : i64, tpu.core_type = #tpu.core_type<tc>, window_params = [{transform_indices = @transform_0, window_bounds = array<i64: 8, 128>}, {transform_indices = @transform_1, window_bounds = array<i64: 128, 128>}, {transform_indices = @transform_2, window_bounds = array<i64: 8, 1>}, {transform_indices = @transform_3, window_bounds = array<i64: 1, 128>}, {transform_indices = @transform_4, window_bounds = array<i64: 8, 128>}]} {
    %c0_i32 = arith.constant 0 : i32
    %0 = arith.cmpi eq, %arg2, %c0_i32 : i32
    %1 = arith.extui %0 : i1 to i32
    %c0_i32_0 = arith.constant 0 : i32
    %2 = arith.cmpi ne, %1, %c0_i32_0 : i32
    scf.if %2 {
      %cst_10 = arith.constant 0.000000e+00 : f32
      %14 = vector.broadcast %cst_10 : f32 to vector<8x128xf32>
      %c0_11 = arith.constant 0 : index
      %c0_12 = arith.constant 0 : index
      %15 = vector.load %arg7[%c0_11, %c0_12] : memref<8x128xf32, #tpu.memory_space<vmem>>, vector<8x128xf32>
      tpu.vector_store %arg7[%c0_11, %c0_12], %14 {strides = array<i32>} : memref<8x128xf32, #tpu.memory_space<vmem>>, vector<8x128xf32>,
    } else {
    }
    %c0 = arith.constant 0 : index
    %c0_1 = arith.constant 0 : index
    %3 = vector.load %arg3[%c0, %c0_1] : memref<8x128xf32, #tpu.memory_space<vmem>>, vector<8x128xf32>
    %4 = arith.truncf %3 : vector<8x128xf32> to vector<8x128xbf16>
    %c0_2 = arith.constant 0 : index
    %c0_3 = arith.constant 0 : index
    %5 = vector.load %arg4[%c0_2, %c0_3] : memref<128x128xf32, #tpu.memory_space<vmem>>, vector<128x128xf32>
    %6 = arith.truncf %5 : vector<128x128xf32> to vector<128x128xbf16>
    %c0_4 = arith.constant 0 : index
    %c0_5 = arith.constant 0 : index
    %7 = vector.load %arg7[%c0_4, %c0_5] : memref<8x128xf32, #tpu.memory_space<vmem>>, vector<8x128xf32>
    %cst = arith.constant dense<0.000000e+00> : vector<8x128xf32>
    %8 = tpu.matmul %4, %6, %cst {dimension_numbers = #tpu.dot_dimension_numbers<[1], [0], [0], [1], [0, 0, 1, 1], [], []>} : vector<8x128xbf16>, vector<128x128xbf16>, vector<8x128xf32> -> vector<8x128xf32>
    %9 = arith.addf %7, %8 : vector<8x128xf32>
    %c0_6 = arith.constant 0 : index
    %c0_7 = arith.constant 0 : index
    %10 = vector.load %arg7[%c0_6, %c0_7] : memref<8x128xf32, #tpu.memory_space<vmem>>, vector<8x128xf32>
    tpu.vector_store %arg7[%c0_6, %c0_7], %9 {strides = array<i32>} : memref<8x128xf32, #tpu.memory_space<vmem>>, vector<8x128xf32>,
    %c0_i32_8 = arith.constant 0 : i32
    %11 = arith.cmpi eq, %arg2, %c0_i32_8 : i32
    %12 = arith.extui %11 : i1 to i32
    %c0_i32_9 = arith.constant 0 : i32
    %13 = arith.cmpi ne, %12, %c0_i32_9 : i32
    scf.if %13 {
      %c0_10 = arith.constant 0 : index
      %c0_11 = arith.constant 0 : index
      %14 = vector.load %arg7[%c0_10, %c0_11] : memref<8x128xf32, #tpu.memory_space<vmem>>, vector<8x128xf32>
      %c0_12 = arith.constant 0 : index
      %c0_13 = arith.constant 0 : index
      %15 = vector.load %arg5[%c0_12, %c0_13] : memref<8x1xf32, #tpu.memory_space<vmem>>, vector<8x1xf32>
      %c0_14 = arith.constant 0 : index
      %c0_15 = arith.constant 0 : index
      %16 = vector.load %arg6[%c0_14, %c0_15] : memref<1x128xf32, #tpu.memory_space<vmem>>, vector<1x128xf32>
      %17 = vector.broadcast %15 : vector<8x1xf32> to vector<8x128xf32>
      %18 = vector.broadcast %16 : vector<1x128xf32> to vector<8x128xf32>
      %19 = arith.mulf %17, %18 : vector<8x128xf32>
      %20 = arith.mulf %14, %19 : vector<8x128xf32>
      %c0_16 = arith.constant 0 : index
      %c0_17 = arith.constant 0 : index
      %21 = vector.load %arg7[%c0_16, %c0_17] : memref<8x128xf32, #tpu.memory_space<vmem>>, vector<8x128xf32>
      tpu.vector_store %arg7[%c0_16, %c0_17], %20 {strides = array<i32>} : memref<8x128xf32, #tpu.memory_space<vmem>>, vector<8x128xf32>,
    } else {
    }
    return
  }
  func.func @transform_0(%arg0: i32, %arg1: i32, %arg2: i32) -> (i32, i32) {
    %c0_i32 = arith.constant 0 : i32
    return %arg0, %arg2 : i32, i32
  }
  func.func @transform_1(%arg0: i32, %arg1: i32, %arg2: i32) -> (i32, i32) {
    %c0_i32 = arith.constant 0 : i32
    return %arg2, %arg1 : i32, i32
  }
  func.func @transform_2(%arg0: i32, %arg1: i32, %arg2: i32) -> (i32, i32) {
    %c0_i32 = arith.constant 0 : i32
    %c0_i32_0 = arith.constant 0 : i32
    return %arg0, %c0_i32 : i32, i32
  }
  func.func @transform_3(%arg0: i32, %arg1: i32, %arg2: i32) -> (i32, i32) {
    %c0_i32 = arith.constant 0 : i32
    %c0_i32_0 = arith.constant 0 : i32
    return %c0_i32, %arg1 : i32, i32
  }
  func.func @transform_4(%arg0: i32, %arg1: i32, %arg2: i32) -> (i32, i32) {
    %c0_i32 = arith.constant 0 : i32
    return %arg0, %arg1 : i32, i32
  }
}

</mosaic_0001>

<bundles_post_ra>
// kernel: cos_linear.1
= control target key start
LH: loop header
LB: loop body
LE: loop exit
PB: predicated region body
PF: predicated region fallthrough
CT: control target
= control target key end

     0   :  { %9 = vsyncpa [#allocation3], 0  ;;  %s433_s0 = inlined_call_operand.hbm [shape: f32[8,128], index: 0, kind: input, shape index: {}]   ;;  %s434_s1 = inlined_call_operand.hbm [shape: f32[128,128], index: 1, kind: input, shape index: {}]   ;;  %s435_s2 = inlined_call_operand.hbm [shape: f32[8,1], index: 2, kind: input, shape index: {}]   ;;  %s436_s3 = inlined_call_operand.hbm [shape: f32[1,128], index: 3, kind: input, shape index: {}]   ;;  %s437_s4 = inlined_call_operand.hbm [shape: f32[8,128], index: 4, kind: output, shape index: {}]  }
   0x1   :  { %10 = vsyncpa [#allocation6], 0 }
   0x2   :  { %11 = vsyncpa [#allocation9], 0 }
   0x3   :  { %12 = vsyncpa [#allocation4], 0  ;;  %s338_s15 = smov [#allocation5]   ;;  %s220_s19 = scalar_lea.hbm %s434_s1, 2048 }
   0x4   :  { %s28_s16 = sshll.u32 %s338_s15, 4  ;;  %p221_p0 = scmp.ne.s32.totalorder %s434_s1, %s220_s19  ;;  %s29_s16 = int_to_ptr.vmem [resolvable:$true] %s28_s16 }
   0x5   :  { %p224_p1 = scmp.lt.u32.totalorder %s220_s19, %s434_s1 }
   0x7   :  { %p226_p2 = pnand %p224_p1, %p221_p0 }
   0x9   :  { %229 = shalt.err (!%p226_p2)
}
   0xa   :  { %s230_s24 = scalar_lea.vmem %s29_s16, 2048  ;;  %p235_p4 = scmp.lt.s32.totalorder %s29_s16, %s29_s16 }
   0xb   :  { %p231_p3 = scmp.ne.s32.totalorder %s29_s16, %s230_s24  ;;  %p236_p5 = scmp.lt.s32.totalorder %s230_s24, %s230_s24 }
   0xd   :  { %p237_p6 = por %p236_p5, %p235_p4 }
   0xf   :  { %p238_p7 = pnand %p237_p6, %p231_p3 }
  0x11   :  { %241 = shalt.err (!%p238_p7)
}
  0x12   :  { %s339_s25 = smov 128   ;;  %s340_s26 = smov 8  }
  0x13   :  { %34 = dma.hbm_to_vmem [thread:$0]  %s434_s1, 2048, %s29_s16, [#allocation6], %s339_s25, %s339_s25, %s340_s26  }
  0x14   :  { %s341_s29 = smov [#allocation2]   ;;  %s342_s5 = smov [#allocation7]  }
  0x15   :  { %s19_s30 = sshll.u32 %s341_s29, 4  ;;  %s41_s6 = sshll.u32 %s342_s5, 4  ;;  %s20_s30 = int_to_ptr.vmem [resolvable:$true] %s19_s30  ;;  %s42_s6 = int_to_ptr.vmem [resolvable:$true] %s41_s6 }
  0x16   :  { %s242_s9 = scalar_lea.hbm %s433_s0, 128 }
  0x17   :  { %p243_p8 = scmp.ne.s32.totalorder %s433_s0, %s242_s9  ;;  %p246_p9 = scmp.lt.u32.totalorder %s242_s9, %s433_s0 }
  0x19   :  { %p248_p10 = pnand %p246_p9, %p243_p8 }
  0x1b   :  { %251 = shalt.err (!%p248_p10)
}
  0x1c   :  { %s252_s1 = scalar_lea.vmem %s20_s30, 128  ;;  %p257_p12 = scmp.lt.s32.totalorder %s20_s30, %s20_s30 }
  0x1d   :  { %p253_p11 = scmp.ne.s32.totalorder %s20_s30, %s252_s1  ;;  %p258_p13 = scmp.lt.s32.totalorder %s252_s1, %s252_s1 }
  0x1f   :  { %p259_p0 = por %p258_p13, %p257_p12 }
  0x21   :  { %p260_p1 = pnand %p259_p0, %p253_p11 }
  0x23   :  { %263 = shalt.err (!%p260_p1)
}
  0x24   :  { %22 = dma.hbm_to_vmem [thread:$0]  %s433_s0, 128, %s20_s30, [#allocation3]  }
  0x25   :  { %s264_s18 = scalar_lea.hbm %s435_s2, 128 }
  0x26   :  { %p265_p2 = scmp.ne.s32.totalorder %s435_s2, %s264_s18  ;;  %p268_p3 = scmp.lt.u32.totalorder %s264_s18, %s435_s2 }
  0x28   :  { %p270_p4 = pnand %p268_p3, %p265_p2 }
  0x2a   :  { %273 = shalt.err (!%p270_p4)
}
  0x2b   :  { %s274_s23 = scalar_lea.vmem %s42_s6, 128  ;;  %p279_p6 = scmp.lt.s32.totalorder %s42_s6, %s42_s6 }
  0x2c   :  { %p275_p5 = scmp.ne.s32.totalorder %s42_s6, %s274_s23  ;;  %p280_p7 = scmp.lt.s32.totalorder %s274_s23, %s274_s23 }
  0x2e   :  { %p281_p8 = por %p280_p7, %p279_p6 }
  0x30   :  { %p282_p9 = pnand %p281_p8, %p275_p5 }
  0x32   :  { %285 = shalt.err (!%p282_p9)
}
  0x33   :  { %44 = dma.hbm_to_vmem [thread:$0]  %s435_s2, 128, %s42_s6, [#allocation6]  }
  0x34   :  { %s343_s25 = smov [#allocation8]   ;;  %s286_s29 = scalar_lea.hbm %s436_s3, 16 }
  0x35   :  { %s51_s26 = sshll.u32 %s343_s25, 4  ;;  %p287_p10 = scmp.ne.s32.totalorder %s436_s3, %s286_s29  ;;  %s52_s26 = int_to_ptr.vmem [resolvable:$true] %s51_s26 }
  0x36   :  { %p290_p11 = scmp.lt.u32.totalorder %s286_s29, %s436_s3 }
  0x38   :  { %p292_p12 = pnand %p290_p11, %p287_p10 }
  0x3a   :  { %295 = shalt.err (!%p292_p12)
}
  0x3b   :  { %s296_s9 = scalar_lea.vmem %s52_s26, 16  ;;  %s300_s2 = scalar_lea.vmem %s52_s26, 32 }
  0x3c   :  { %p297_p13 = scmp.ne.s32.totalorder %s52_s26, %s296_s9  ;;  %p301_p0 = scmp.lt.s32.totalorder %s52_s26, %s52_s26 }
  0x3d   :  { %p302_p1 = scmp.lt.s32.totalorder %s300_s2, %s296_s9 }
  0x3f   :  { %p303_p2 = por %p302_p1, %p301_p0 }
  0x41   :  { %p304_p3 = pnand %p303_p2, %p297_p13 }
  0x43   :  { %307 = shalt.err (!%p304_p3)
}
  0x44   :  { %54 = dma.hbm_to_vmem [thread:$0]  %s436_s3, 16, %s52_s26, [#allocation9]  }
  0x45   :  { %330 = dma.done.wait [#allocation3], 128  }
  0x46   :  { %331 = vsyncadd [#allocation3], 4294967168 }
  0x47   :  { %332 = dma.done.wait [#allocation6], 2176  }
  0x48   :  { %333 = vsyncadd [#allocation6], 4294965120 }
  0x49   :  { %334 = dma.done.wait [#allocation9], 16  }
  0x4a   :  { %335 = vsyncadd [#allocation9], 4294967280  ;;  %v344_v0 = vmov 0.0   ;;  %vm345_vm0 = vmmov 0   ;;  %v346_v1 = vmov 0   ;;  %v75_v2 = vld [vmem:[#allocation5] sm:$0xff] }
  0x4b   :  { %189 = vmatprep.subr.bf16.mxu0 %v344_v0  ;;  %205 = vmatprep.mubr.msk.bf16.mxu0 %vm345_vm0, %v344_v0  ;;  %v76_v3 = vld [vmem:[#allocation5 + $0x8] sm:$0xff]  ;;  %v77_v4 = vld [vmem:[#allocation5 + $0x10] sm:$0xff]  ;;  %v78_v6 = vld [vmem:[#allocation5 + $0x18] sm:$0xff]  ;;  %s347_s3 = smov [#allocation10]  }
  0x4c   :  { %219 = vset.pattern.permute.xlu0 %v346_v1  ;;  %v91_v5 = vpack.c.bf16 %v76_v3, %v75_v2  ;;  %v92_v7 = vpack.c.bf16 %v78_v6, %v77_v4  ;;  %v79_v8 = vld [vmem:[#allocation5 + $0x20] sm:$0xff]  ;;  %v80_v9 = vld [vmem:[#allocation5 + $0x28] sm:$0xff]  ;;  %v81_v12 = vld [vmem:[#allocation5 + $0x30] sm:$0xff]  ;;  %s168_s11 = sshll.u32 %s347_s3, 4  ;;  %s169_s11 = int_to_ptr.vmem [resolvable:$true] %s168_s11 }
  0x4d   :  { %v146_v10 = vld [vmem:[#allocation7] sm:$0xff]  ;;  %v93_v11 = vpack.c.bf16 %v80_v9, %v79_v8  ;;  %v82_v13 = vld [vmem:[#allocation5 + $0x38] sm:$0xff]  ;;  %v84_v16 = vld [vmem:[#allocation5 + $0x48] sm:$0xff]  ;;  %s308_s12 = scalar_lea.vmem %s169_s11, 128  ;;  %p313_p5 = scmp.lt.s32.totalorder %s169_s11, %s169_s11 }
  0x4e   :  { %190 = vmatpush3.bf16.msra.mxu0 %v91_v5  ;;  %150 = vperm.xlu0 %219, %v146_v10   ;;  %v94_v14 = vpack.c.bf16 %v82_v13, %v81_v12  ;;  %v83_v15 = vld [vmem:[#allocation5 + $0x40] sm:$0xff]  ;;  %v85_v18 = vld [vmem:[#allocation5 + $0x50] sm:$0xff]  ;;  %v86_v19 = vld [vmem:[#allocation5 + $0x58] sm:$0xff]  ;;  %p309_p4 = scmp.ne.s32.totalorder %s169_s11, %s308_s12  ;;  %p314_p6 = scmp.lt.s32.totalorder %s308_s12, %s308_s12 }
  0x4f   :  { %191 = vmatprep.subr.bf16.mxu0 %v344_v0  ;;  %v95_v17 = vpack.c.bf16 %v84_v16, %v83_v15  ;;  %v96_v20 = vpack.c.bf16 %v86_v19, %v85_v18  ;;  %v87_v21 = vld [vmem:[#allocation5 + $0x60] sm:$0xff]  ;;  %v88_v22 = vld [vmem:[#allocation5 + $0x68] sm:$0xff]  ;;  %v89_v24 = vld [vmem:[#allocation5 + $0x70] sm:$0xff] }
  0x50   :  { %v97_v23 = vpack.c.bf16 %v88_v22, %v87_v21  ;;  %v90_v25 = vld [vmem:[#allocation5 + $0x78] sm:$0xff]  ;;  %v179_v29 = vld [vmem:[#allocation8] ss:$0 sm:$0xff]  ;;  %p315_p7 = por %p314_p6, %p313_p5 }
  0x51   :  { %v98_v26 = vpack.c.bf16 %v90_v25, %v89_v24  ;;  %v73_v27 = vld [vmem:[#allocation2] sm:$0xff] }
  0x52   :  { %192 = vmatpush3.bf16.msra.mxu0 %v92_v7  ;;  %v74_v28 = vpack.c.bf16 %v73_v27, %v73_v27  ;;  %p316_p8 = pnand %p315_p7, %p309_p4 }
  0x53   :  { %193 = vmatprep.subr.bf16.mxu0 %v344_v0 }
  0x56   :  { %194 = vmatpush3.bf16.msra.mxu0 %v93_v11 }
  0x57   :  { %195 = vmatprep.subr.bf16.mxu0 %v344_v0 }
  0x5a   :  { %196 = vmatpush3.bf16.msra.mxu0 %v94_v14 }
  0x5b   :  { %197 = vmatprep.subr.bf16.mxu0 %v344_v0 }
  0x5e   :  { %198 = vmatpush3.bf16.msra.mxu0 %v95_v17 }
  0x5f   :  { %199 = vmatprep.subr.bf16.mxu0 %v344_v0 }
  0x62   :  { %200 = vmatpush3.bf16.msra.mxu0 %v96_v20 }
  0x63   :  { %201 = vmatprep.subr.bf16.mxu0 %v344_v0 }
  0x66   :  { %202 = vmatpush3.bf16.msra.mxu0 %v97_v23 }
  0x67   :  { %203 = vmatprep.subr.bf16.mxu0 %v344_v0 }
  0x6a   :  { %204 = vmatpush3.bf16.msra.mxu0 %v98_v26 }
  0x6d   :  { %206 = vmatmul.mubr.bf16.vlgmr.msra.gmra.mrb[0].mxu0 %v74_v28 }
  0xcd   :  { %v151_v30 = vpop.permute.xlu0 %150 }
  0xce   :  { %v159_v31 = vmul.f32 %v179_v29, %v151_v30 }
 0x140   :  { %v134_v32 = vpop.f32.mrb[0].mxu0 }
 0x141   :  { %v207_v33 = vpop.f32.mrb[1].mxu0  ;;  %v160_v36 = vmul.f32 %v159_v31, %v134_v32 }
 0x142   :  { %v137_v34 = vpop.f32.mrb[2].mxu0 }
 0x143   :  { %v208_v35 = vpop.f32.mrb[3].mxu0  ;;  %161 = vst [vmem:[#allocation10] sm:$0xff] %v160_v36 }
 0x144   :  { %319 = shalt.err (!%p316_p8)
}
 0x145   :  { %s320_s14 = scalar_lea.hbm %s437_s4, 128 }
 0x146   :  { %p321_p9 = scmp.ne.s32.totalorder %s437_s4, %s320_s14  ;;  %p324_p10 = scmp.lt.u32.totalorder %s320_s14, %s437_s4 }
 0x148   :  { %p326_p11 = pnand %p324_p10, %p321_p9 }
 0x14a   :  { %329 = shalt.err (!%p326_p11)
}
 0x14b   :  { %171 = dma.vmem_to_hbm [thread:$0]  %s169_s11, 128, %s437_s4, [#allocation4]  }
 0x14c   :  { %336 = dma.done.wait [#allocation4], 128  }
 0x14d   :  { %337 = vsyncadd [#allocation4], 4294967168 }
 0x14e   :  { %175 = vsyncpa [#allocation3], 1 }
 0x14f   :  { %176 = vsyncpa [#allocation6], 1 }
 0x150   :  { %177 = vsyncpa [#allocation9], 1 }
 0x151   :  { %178 = vsyncpa [#allocation4], 1 }

</bundles_post_ra>
